<compile_context>
chip_gen: v6e
topology: v6e:2x2x1
jax: 0.10.0
libtpu: 0.0.40
codegen_flags: <defaults>
</compile_context>

<pallas_src>
import functools

import jax
import jax.numpy as jnp
from jax.experimental import pallas as pl
from jax.experimental.pallas import tpu as pltpu


# ----------------------------- small helpers ---------------------------------

def _round_up(n: int, m: int) -> int:
    return ((n + m - 1) // m) * m


def _pad_axis(arr, axis, target):
    pad = target - arr.shape[axis]
    if pad == 0:
        return arr
    widths = [(0, 0)] * arr.ndim
    widths[axis] = (0, pad)
    return jnp.pad(arr, widths)


# ----------------------------- parameter prep (plain JAX, run once) ----------

def _mp_normalize(w, eps=1e-4):
    # w: (out_dim, in_dim); per-output-row normalization (EDM2 `normalize`)
    fan_in = w.shape[1]
    norm = jnp.linalg.norm(w.astype(jnp.float32), axis=1, keepdims=True)
    norm = eps + norm / jnp.sqrt(jnp.float32(fan_in))
    return (w / norm).astype(w.dtype)


def mp_linear_effective_weight(w, use_wn=True, use_forced_wn=True):
    # Effective weight used in the forward pass (eval mode).
    # TODO(synk): forced-WN in-place weight renorm only matters in training mode.
    fan_in = w.shape[1]
    if use_forced_wn:
        w = _mp_normalize(w)
    if use_wn:
        w = _mp_normalize(w) / jnp.sqrt(jnp.float32(fan_in))
    return w


def prepare_mlp_params(w1, w2, *, use_wn=True, use_forced_wn=True,
                       use_mp_silu=True, compute_dtype=jnp.bfloat16):
    """One-time prep: normalize, fold MPSiLU gain into w2, transpose, pad, cast.

    w1: (hidden, in_dim), w2: (out_dim, hidden).
    Returns a dict consumed by mlp_forward.
    """
    assert use_mp_silu, "kernel implements the MPSiLU path"
    in_dim = w1.shape[1]
    hidden = w1.shape[0]
    out_dim = w2.shape[0]

    w1_eff = mp_linear_effective_weight(w1, use_wn, use_forced_wn)
    w2_eff = mp_linear_effective_weight(w2, use_wn, use_forced_wn)
    # Fold the MPSiLU 1/0.596 gain into w2 (removes an in-kernel VPU multiply).
    w2_eff = w2_eff * jnp.float32(1.0 / 0.596).astype(w2_eff.dtype)

    # Pad every feature dim to a multiple of 128 (lane-dense loads/stores).
    in_p = _round_up(in_dim, 128)
    hid_p = _round_up(hidden, 128)
    out_p = _round_up(out_dim, 128)

    w1_t = _pad_axis(_pad_axis(w1_eff.T, 0, in_p), 1, hid_p).astype(compute_dtype)
    w2_t = _pad_axis(_pad_axis(w2_eff.T, 0, hid_p), 1, out_p).astype(compute_dtype)

    return {
        "w1_t": w1_t, "w2_t": w2_t,
        "in_dim": in_dim, "out_dim": out_dim,
        "in_p": in_p, "hid_p": hid_p, "out_p": out_p,
        "compute_dtype": compute_dtype,
    }


# ----------------------------- Pallas kernel ---------------------------------

def _mlp_kernel(x_ref, w1_ref, w2_ref, o_ref):
    # x_ref : (tm, in_p)     VMEM  bf16
    # w1_ref: (in_p, hid_p)  VMEM  bf16 (pre-transposed, resident)
    # w2_ref: (hid_p, out_p) VMEM  bf16 (pre-transposed, resident, includes 1/0.596)
    # o_ref : (tm, out_p)    VMEM
    h = jnp.dot(x_ref[...], w1_ref[...], preferred_element_type=jnp.float32)
    # SiLU in f32 (EUP sigmoid; the MPSiLU gain is folded into w2).
    h = h * jax.nn.sigmoid(h)
    out = jnp.dot(h.astype(w2_ref.dtype), w2_ref[...],
                  preferred_element_type=jnp.float32)
    o_ref[...] = out.astype(o_ref.dtype)


def mlp_pallas(x2d, w1_t, w2_t, *, out_dtype, tm_max=256):
    """x2d: (N, in_p) bf16; w1_t: (in_p, hid_p); w2_t: (hid_p, out_p)."""
    N, in_p = x2d.shape
    hid_p = w1_t.shape[1]
    out_p = w2_t.shape[1]

    # Row tile: as large as tm_max, but keep >= 2 grid steps (v7x has 2 TCs)
    # and a multiple of 8 sublanes.  Rows are zero-padded to a tile multiple.
    tm = min(tm_max, _round_up(max((N + 1) // 2, 8), 8))
    n_pad = _round_up(N, tm)
    x2d = _pad_axis(x2d, 0, n_pad)
    grid = (n_pad // tm,)

    out_itemsize = jnp.dtype(out_dtype).itemsize
    # Conservative VMEM budget: double-buffered x / out tiles, (x2) resident
    # weights, a few f32 (tm, hid_p) intermediates, plus headroom.
    vmem_bytes = (
        2 * tm * in_p * 2
        + 2 * tm * out_p * out_itemsize
        + 2 * in_p * hid_p * 2
        + 2 * hid_p * out_p * 2
        + 3 * tm * hid_p * 4
        + (4 << 20)
    )
    vmem_limit = int(min(max(vmem_bytes, 32 << 20), 64 << 20))  # v7x-safe cap

    cost = pl.CostEstimate(
        flops=2 * n_pad * in_p * hid_p + 2 * n_pad * hid_p * out_p,
        transcendentals=n_pad * hid_p,
        bytes_accessed=(n_pad * in_p + in_p * hid_p + hid_p * out_p) * 2
        + n_pad * out_p * out_itemsize,
    )

    out = pl.pallas_call(
        _mlp_kernel,
        out_shape=jax.ShapeDtypeStruct((n_pad, out_p), out_dtype),
        grid_spec=pltpu.PrefetchScalarGridSpec(
            num_scalar_prefetch=0,
            grid=grid,
            in_specs=[
                pl.BlockSpec((tm, in_p), lambda i: (i, 0)),
                pl.BlockSpec((in_p, hid_p), lambda i: (0, 0)),
                pl.BlockSpec((hid_p, out_p), lambda i: (0, 0)),
            ],
            out_specs=pl.BlockSpec((tm, out_p), lambda i: (i, 0)),
        ),
        compiler_params=pltpu.CompilerParams(
            dimension_semantics=("parallel",),
            vmem_limit_bytes=vmem_limit,
        ),
        cost_estimate=cost,
    )(x2d, w1_t, w2_t)
    return out[:N]


# ----------------------------- module wrapper ---------------------------------

def mlp_forward(x, params):
    # x: (..., in_dim)
    lead = x.shape[:-1]
    out_dtype = x.dtype
    x2d = x.reshape(-1, x.shape[-1])
    # Zero-pad features to the lane-dense padded in_dim, cast to bf16.
    x2d = _pad_axis(x2d, 1, params["in_p"]).astype(params["compute_dtype"])
    out = mlp_pallas(x2d, params["w1_t"], params["w2_t"], out_dtype=out_dtype)
    out = out[:, : params["out_dim"]]
    return out.reshape(*lead, params["out_dim"])


def mlp_reference(x, w1, w2, *, use_wn=True, use_forced_wn=True):
    # Pure f32 reference matching the PyTorch module semantics.
    w1_eff = mp_linear_effective_weight(w1, use_wn, use_forced_wn)
    w2_eff = mp_linear_effective_weight(w2, use_wn, use_forced_wn)
    h = x @ w1_eff.T
    h = (h * jax.nn.sigmoid(h)) / 0.596
    return h @ w2_eff.T


# ----------------------------- main -------------------------------------------

if __name__ == "__main__":
    key = jax.random.PRNGKey(0)
    k_x, k_w1, k_w2 = jax.random.split(key, 3)

    batch, seq = 2, 8
    in_dim, out_dim = 32, 32
    mlp_ratio = 4.0
    hidden_dim = int(in_dim * mlp_ratio)  # 128

    # MPLinear weights are initialized from a standard normal (WN normalizes).
    x = jax.random.normal(k_x, (batch, seq, in_dim), dtype=jnp.float32)
    w1 = jax.random.normal(k_w1, (hidden_dim, in_dim), dtype=jnp.float32)
    w2 = jax.random.normal(k_w2, (out_dim, hidden_dim), dtype=jnp.float32)

    params = prepare_mlp_params(w1, w2, use_wn=True, use_forced_wn=True,
                                use_mp_silu=True)

    out = mlp_forward(x, params)
    out = jax.block_until_ready(out)

    ref = mlp_reference(x, w1, w2)
    assert out.shape == (batch, seq, out_dim)
    # bf16 compute with f32 accumulation vs pure-f32 reference -> loose tol.
    assert jnp.allclose(out, ref, atol=5e-2, rtol=5e-2), (
        float(jnp.max(jnp.abs(out - ref))))

    print("KERNEL_OK")
</pallas_src>

<mosaic_0001>
module attributes {stable_mosaic.version = 11 : i64} {
  func.func @_mlp_kernel(%arg0: i32, %arg1: memref<8x128xbf16, #tpu.memory_space<vmem>>, %arg2: memref<128x128xbf16, #tpu.memory_space<vmem>>, %arg3: memref<128x128xbf16, #tpu.memory_space<vmem>>, %arg4: memref<8x128xf32, #tpu.memory_space<vmem>>) attributes {dimension_semantics = [#tpu.dimension_semantics<parallel>], iteration_bounds = array<i64: 2>, scalar_prefetch = 0 : i64, scratch_operands = 0 : i64, tpu.core_type = #tpu.core_type<tc>, window_params = [{transform_indices = @transform_0, window_bounds = array<i64: 8, 128>}, {pipeline_mode = #tpu.pipeline_mode<synchronous>, transform_indices = @transform_1, window_bounds = array<i64: 128, 128>}, {pipeline_mode = #tpu.pipeline_mode<synchronous>, transform_indices = @transform_2, window_bounds = array<i64: 128, 128>}, {transform_indices = @transform_3, window_bounds = array<i64: 8, 128>}]} {
    %c0 = arith.constant 0 : index
    %c0_0 = arith.constant 0 : index
    %0 = vector.load %arg1[%c0, %c0_0] : memref<8x128xbf16, #tpu.memory_space<vmem>>, vector<8x128xbf16>
    %c0_1 = arith.constant 0 : index
    %c0_2 = arith.constant 0 : index
    %1 = vector.load %arg2[%c0_1, %c0_2] : memref<128x128xbf16, #tpu.memory_space<vmem>>, vector<128x128xbf16>
    %cst = arith.constant dense<0.000000e+00> : vector<8x128xf32>
    %2 = tpu.matmul %0, %1, %cst {dimension_numbers = #tpu.dot_dimension_numbers<[1], [0], [0], [1], [0, 0, 1, 1], [], []>} : vector<8x128xbf16>, vector<128x128xbf16>, vector<8x128xf32> -> vector<8x128xf32>
    %3 = arith.negf %2 : vector<8x128xf32>
    %4 = math.exp %3 : vector<8x128xf32>
    %cst_3 = arith.constant 1.000000e+00 : f32
    %5 = vector.broadcast %cst_3 : f32 to vector<8x128xf32>
    %6 = arith.addf %5, %4 : vector<8x128xf32>
    %7 = arith.divf %5, %6 : vector<8x128xf32>
    %8 = arith.mulf %2, %7 : vector<8x128xf32>
    %9 = arith.truncf %8 : vector<8x128xf32> to vector<8x128xbf16>
    %c0_4 = arith.constant 0 : index
    %c0_5 = arith.constant 0 : index
    %10 = vector.load %arg3[%c0_4, %c0_5] : memref<128x128xbf16, #tpu.memory_space<vmem>>, vector<128x128xbf16>
    %cst_6 = arith.constant dense<0.000000e+00> : vector<8x128xf32>
    %11 = tpu.matmul %9, %10, %cst_6 {dimension_numbers = #tpu.dot_dimension_numbers<[1], [0], [0], [1], [0, 0, 1, 1], [], []>} : vector<8x128xbf16>, vector<128x128xbf16>, vector<8x128xf32> -> vector<8x128xf32>
    %c0_7 = arith.constant 0 : index
    %c0_8 = arith.constant 0 : index
    %12 = vector.load %arg4[%c0_7, %c0_8] : memref<8x128xf32, #tpu.memory_space<vmem>>, vector<8x128xf32>
    tpu.vector_store %arg4[%c0_7, %c0_8], %11 {strides = array<i32>} : memref<8x128xf32, #tpu.memory_space<vmem>>, vector<8x128xf32>,
    return
  }
  func.func @transform_0(%arg0: i32) -> (i32, i32) {
    %c0_i32 = arith.constant 0 : i32
    %c0_i32_0 = arith.constant 0 : i32
    return %arg0, %c0_i32 : i32, i32
  }
  func.func @transform_1(%arg0: i32) -> (i32, i32) {
    %c0_i32 = arith.constant 0 : i32
    %c0_i32_0 = arith.constant 0 : i32
    %c0_i32_1 = arith.constant 0 : i32
    return %c0_i32, %c0_i32_0 : i32, i32
  }
  func.func @transform_2(%arg0: i32) -> (i32, i32) {
    %c0_i32 = arith.constant 0 : i32
    %c0_i32_0 = arith.constant 0 : i32
    %c0_i32_1 = arith.constant 0 : i32
    return %c0_i32, %c0_i32_0 : i32, i32
  }
  func.func @transform_3(%arg0: i32) -> (i32, i32) {
    %c0_i32 = arith.constant 0 : i32
    %c0_i32_0 = arith.constant 0 : i32
    return %arg0, %c0_i32 : i32, i32
  }
}

</mosaic_0001>

<bundles_post_ra>
// kernel: tpu_custom_call.1
= control target key start
LH: loop header
LB: loop body
LE: loop exit
PB: predicated region body
PF: predicated region fallthrough
CT: control target
= control target key end

     0   :  { %8 = vsyncpa [#allocation3], 0  ;;  %s1078_s0 = inlined_call_operand.hbm [shape: bf16[16,128], index: 0, kind: input, shape index: {}]   ;;  %s1079_s1 = inlined_call_operand.hbm [shape: bf16[128,128], index: 1, kind: input, shape index: {}]   ;;  %s1080_s2 = inlined_call_operand.hbm [shape: bf16[128,128], index: 2, kind: input, shape index: {}]   ;;  %s1081_s3 = inlined_call_operand.hbm [shape: f32[16,128], index: 3, kind: output, shape index: {}]  }
   0x1   :  { %10 = vsyncpa [#allocation3 + $0x1], 0 }
   0x2   :  { %11 = vsyncpa [#allocation6], 0 }
   0x3   :  { %12 = vsyncpa [#allocation4], 0 }
   0x4   :  { %14 = vsyncpa [#allocation4 + $0x1], 0  ;;  %s897_s12 = smov 0   ;;  %s899_s13 = smov 0  }
   0x5   :  { %s901_s14 = smov 0   ;;  %s903_s15 = smov 0  }
   0x6 LB: > { %s918_s16 = sadd.s32 4294967295, %s867_s15   ;;  %s537_s17 = sadd.s32 4294967294, %s867_s15   ;;  %s867_s15 = sphi %s903_s15, %s1103_s15   ;;  %s863_s14 = sphi %s901_s14, %s1102_s14   ;;  %s859_s13 = sphi %s899_s13, %s1101_s13   ;;  %s855_s12 = sphi %s897_s12, %s1100_s12  }
   0x7   : > { %p40_p0 = scmp.ne.s32.totalorder %s859_s13, %s855_s12  ;;  %p1082_p1 = scmp.eq.s32.totalorder %s918_s16, 0 }
   0x8   : > { %p112_p3 = scmp.eq.s32.totalorder %s537_s17, 1  ;;  %p538_p5 = scmp.ge.s32.totalorder %s867_s15, 1 }
   0x9   : > { %p927_p4 = por %p1082_p1, %p40_p0  ;;  %p119_p7 = scmp.lt.s32.totalorder %s867_s15, 3 }
   0xa   : > { %p932_p6 = por %p112_p3, %p40_p0  ;;  %s869_s21 = smov [#allocation5]  }
   0xb   : > { %s1086_s18 = scalar_select %p927_p4, 1, 0 }
   0xc   : > { %s1087_s19 = scalar_select %p932_p6, 1, 0 }
   0xd   : > { %p937_p8 = pnand %p538_p5, %p119_p7  ;;  %s131_s22 = sshll.u32 %s869_s21, 4  ;;  %s132_s22 = int_to_ptr.vmem [resolvable:$true] %s131_s22 }
   0xe   : > { %s870_s24 = smov [#allocation7]   ;;  %s730_s26 = scalar_lea.vmem %s132_s22, 1024 }
   0xf   : > { %s1088_s20 = scalar_select %p937_p8, 1, 0 }
  0x10   : > { %p640_p9 = pneg %p937_p8  ;;  %s144_s25 = sshll.u32 %s870_s24, 4  ;;  %s145_s25 = int_to_ptr.vmem [resolvable:$true] %s144_s25 }
  0x11   : > { %p731_p13 = scmp.ne.s32.totalorder %s132_s22, %s730_s26  ;;  %p738_p5 = scmp.lt.s32.totalorder %s132_s22, %s132_s22 }
  0x12   : > { %p946_p11 = pnand %p640_p9, %p1082_p1  ;;  %p739_p7 = scmp.lt.s32.totalorder %s730_s26, %s730_s26 }
  0x14   : > { %p721_p12 = pneg %p946_p11  ;;  %p740_p10 = por %p739_p7, %p738_p5 }
  0x16   : > { %p733_p0 = pnand %p731_p13, %p721_p12 }
  0x18   : > { %p734_p3 = pneg %p733_p0 }
  0x1a   : > { %p741_p9 = pnand %p740_p10, %p734_p3 }
  0x1c   : > { %744 = shalt.err (!%p741_p9)
}
  0x1d   : > { %s871_s27 = smov 64   ;;  %s872_s28 = smov 4  }
  0x1e   : > { %643 = dma.hbm_to_vmem [thread:$0]  (!%p946_p11), %s1079_s1, 1024, %s132_s22, [#allocation6], %s871_s27, %s871_s27, %s872_s28  }
  0x1f   : > { %s756_s4 = scalar_lea.vmem %s145_s25, 1024  ;;  %p764_p2 = scmp.lt.s32.totalorder %s145_s25, %s145_s25 }
  0x20   : > { %p757_p1 = scmp.ne.s32.totalorder %s145_s25, %s756_s4  ;;  %p765_p6 = scmp.lt.s32.totalorder %s756_s4, %s756_s4 }
  0x22   : > { %p759_p13 = pnand %p757_p1, %p721_p12  ;;  %p766_p5 = por %p765_p6, %p764_p2 }
  0x24   : > { %p760_p0 = pneg %p759_p13 }
  0x26   : > { %p767_p10 = pnand %p766_p5, %p760_p0 }
  0x28   : > { %770 = shalt.err (!%p767_p10)
}
  0x29   : > { %646 = dma.hbm_to_vmem [thread:$0]  (!%p946_p11), %s1080_s2, 1024, %s145_s25, [#allocation6], %s871_s27, %s871_s27, %s872_s28  }
  0x2a   : > { %s969_s7 = sadd.s32 1, %s867_s15   ;;  %s27_s8 = sadd.s32 1, %s863_s14 }
  0x2b   : > { %s24_s9 = ssub.s32 %s867_s15, %s969_s7  ;;  %p34_p1 = scmp.ne.s32.totalorder %s863_s14, %s859_s13 }
  0x2c   : > { %p25_p2 = scmp.eq.s32.totalorder %s24_s9, 0  ;;  %p35_p6 = scmp.eq.s32.totalorder %s867_s15, 0 }
  0x2d   : > { %p1090_p12 = scmp.eq.s32.totalorder %s918_s16, 1  ;;  %p657_p7 = scmp.lt.s32.totalorder %s867_s15, 2 }
  0x2e   : > { %s985_s11 = scalar_select %p25_p2, %s863_s14, %s27_s8  }
  0x2f   : > { %p979_p3 = por %p1090_p12, %p34_p1  ;;  %p36_p9 = por %p35_p6, %p34_p1 }
  0x30   : > { %s158_s17 = sand.u32 1, %s863_s14   ;;  %s543_s22 = sshll.u32 %s867_s15, 6 }
  0x31   : > { %s1091_s10 = scalar_select %p979_p3, 1, 0 }
  0x32   : > { %s542_s21 = sshll.u32 %s158_s17, 2  ;;  %s992_s25 = scalar_lea.hbm %s1078_s0, %s543_s22 }
  0x33   : > { %s162_s26 = scalar_lea.vmem [#allocation2], %s542_s21  ;;  %p994_p11 = pnand %p657_p7, %p36_p9 }
  0x34   : > { %s169_s27 = sshll.u32 %s162_s26, 4  ;;  %s159_s29 = scalar_lea.sflag [#allocation3], %s158_s17  ;;  %s170_s27 = int_to_ptr.vmem [resolvable:$true] %s169_s27 }
  0x35   : > { %s771_s30 = scalar_lea.hbm %s992_s25, 64  ;;  %p773_p0 = pneg %p994_p11 }
  0x36   : > { %p772_p13 = scmp.ne.s32.totalorder %s992_s25, %s771_s30  ;;  %s776_s6 = scalar_lea.hbm %s1078_s0, 128 }
  0x37   : > { %p777_p1 = scmp.lt.s32.totalorder %s992_s25, %s1078_s0  ;;  %p778_p2 = scmp.lt.s32.totalorder %s776_s6, %s771_s30 }
  0x38   : > { %p774_p5 = pnand %p773_p0, %p772_p13 }
  0x39   : > { %p779_p6 = por %p778_p2, %p777_p1 }
  0x3a   : > { %p775_p10 = pneg %p774_p5 }
  0x3c   : > { %p780_p12 = pnand %p779_p6, %p775_p10 }
  0x3e   : > { %783 = shalt.err (!%p780_p12)
}
  0x3f   : > { %s784_s21 = scalar_lea.vmem %s170_s27, 64  ;;  %s873_s17 = smov [#allocation2]  }
  0x40   : > { %p785_p7 = scmp.ne.s32.totalorder %s170_s27, %s784_s21  ;;  %s789_s22 = sshll.u32 %s873_s17, 4  ;;  %s790_s22 = int_to_ptr.vmem [resolvable:$false] %s789_s22 }
  0x41   : > { %s791_s23 = scalar_lea.vmem %s790_s22, 128  ;;  %p792_p13 = scmp.lt.s32.totalorder %s170_s27, %s790_s22 }
  0x42   : > { %p787_p9 = pnand %p785_p7, %p773_p0  ;;  %p793_p5 = scmp.lt.s32.totalorder %s791_s23, %s784_s21 }
  0x44   : > { %p788_p3 = pneg %p787_p9  ;;  %p794_p4 = por %p793_p5, %p792_p13 }
  0x46   : > { %p795_p8 = pnand %p794_p4, %p788_p3 }
  0x48   : > { %798 = shalt.err (!%p795_p8)
}
  0x49   : > { %650 = dma.hbm_to_vmem [thread:$0]  (!%p994_p11), %s992_s25, 64, %s170_s27, %s159_s29  }
  0x4a   : > { %p1093_p10 = scmp.ne.s32.totalorder %s1088_s20, 0 }
  0x4b   : > { %s1015_s24 = sand.u32 (!%p1093_p10), 1, %s859_s13   ;;  %p1094_p0 = scmp.ne.s32.totalorder (!%p1093_p10), %s1086_s18, 0 }
  0x4c   : > { %178 = sbr.rel (%p1093_p10) target bundleno = 557 (0x22d), region = 32  ;;  %s545_s26 = sshll.u32 (!%p1093_p10), %s1015_s24, 2 }
  0x4d   : > { %s181_s30 = scalar_lea.sflag (!%p1093_p10), [#allocation3], %s1015_s24  ;;  %s1019_s4 = scalar_lea.vmem (!%p1093_p10), [#allocation2], %s545_s26 }
  0x51   : > { %842 = dma.done.wait (%p1094_p0), %s181_s30, 64  }
  0x52   : > { %844 = vsyncadd (%p1094_p0), %s181_s30, 4294967232  ;;  %p1095_p4 = scmp.eq.s32.totalorder %s918_s16, 0 }
  0x54   : > { %846 = dma.done.wait (%p1095_p4), [#allocation6], 2048   ;;  %p1096_p8 = pmov %p1095_p4 }
  0x55   : > { %v874_v0 = vmov 0.0   ;;  %vm875_vm0 = vmmov 0   ;;  %v699_v1 = vld [vmem:[#allocation5 + $0x38] sm:$0xff]   ;;  %v700_v2 = vld [vmem:[#allocation5 + $0x30] sm:$0xff]   ;;  %v701_v3 = vld [vmem:[#allocation5 + $0x28] sm:$0xff]   ;;  %s548_s18 = sshll.u32 %s1015_s24, 3 }
  0x56   : > { %848 = vsyncadd (%p1096_p8), [#allocation6], 4294965248  ;;  %588 = vmatprep.subr.bf16.mxu0 %v874_v0  ;;  %604 = vmatprep.mubr.msk.bf16.mxu0 %vm875_vm0, %v874_v0  ;;  %v702_v4 = vld [vmem:[#allocation5 + $0x20] sm:$0xff]   ;;  %v703_v5 = vld [vmem:[#allocation5 + $0x18] sm:$0xff]   ;;  %s214_s20 = scalar_lea.vmem [#allocation8], %s548_s18  ;;  %s567_s27 = sshll.u32 %s918_s16, 7 }
  0x57   : > { %608 = vmatprep.subr.bf16.mxu1 %v874_v0  ;;  %624 = vmatprep.mubr.msk.bf16.mxu1 %vm875_vm0, %v874_v0  ;;  %v704_v6 = vld [vmem:[#allocation5 + $0x10] sm:$0xff]   ;;  %v705_v7 = vld [vmem:[#allocation5 + $0x8] sm:$0xff]   ;;  %v706_v8 = vld [vmem:[#allocation5] sm:$0xff]   ;;  %s448_s25 = sshll.u32 %s214_s20, 4  ;;  %s1037_s5 = scalar_lea.hbm %s1081_s3, %s567_s27  ;;  %s1032_s25 = int_to_ptr.vmem [resolvable:$true] %s448_s25 }
  0x58   : > { %589 = vmatpush3.bf16.msra.mxu0 %v699_v1  ;;  %v216_v9 = vld [vmem:[%s1019_s4] sm:$0xf]  ;;  %v708_v11 = vld [vmem:[#allocation7 + $0x30] sm:$0xff]   ;;  %v709_v12 = vld [vmem:[#allocation7 + $0x28] sm:$0xff]   ;;  %s435_s6 = scalar_lea.sflag [#allocation4], %s1015_s24  ;;  %s799_s8 = scalar_lea.vmem %s1032_s25, 128 }
  0x59   : > { %590 = vmatprep.subr.bf16.mxu0 %v874_v0  ;;  %v707_v10 = vld [vmem:[#allocation7 + $0x38] sm:$0xff]   ;;  %v710_v13 = vld [vmem:[#allocation7 + $0x20] sm:$0xff]   ;;  %v712_v15 = vld [vmem:[#allocation7 + $0x10] sm:$0xff]   ;;  %p800_p3 = scmp.ne.s32.totalorder %s1032_s25, %s799_s8  ;;  %p1097_p11 = scmp.ne.s32.totalorder %s1091_s10, 0 }
  0x5a   : > { %609 = vmatpush3.bf16.msra.mxu1 %v707_v10  ;;  %v711_v14 = vld [vmem:[#allocation7 + $0x18] sm:$0xff]   ;;  %v713_v16 = vld [vmem:[#allocation7 + $0x8] sm:$0xff]   ;;  %v714_v17 = vld [vmem:[#allocation7] sm:$0xff]   ;;  %s876_s16 = smov [#allocation8]  }
  0x5b   : > { %610 = vmatprep.subr.bf16.mxu1 %v874_v0  ;;  %p801_p1 = pnand %p800_p3, %p1097_p11  ;;  %s803_s9 = sshll.u32 %s876_s16, 4  ;;  %s804_s9 = int_to_ptr.vmem [resolvable:$false] %s803_s9 }
  0x5c   : > { %591 = vmatpush3.bf16.msra.mxu0 %v700_v2  ;;  %s805_s21 = scalar_lea.vmem %s804_s9, 256  ;;  %p806_p6 = scmp.lt.s32.totalorder %s1032_s25, %s804_s9 }
  0x5d   : > { %592 = vmatprep.subr.bf16.mxu0 %v874_v0  ;;  %p802_p2 = pneg %p801_p1  ;;  %p807_p12 = scmp.lt.s32.totalorder %s805_s21, %s799_s8 }
  0x5e   : > { %611 = vmatpush3.bf16.msra.mxu1 %v708_v11 }
  0x5f   : > { %612 = vmatprep.subr.bf16.mxu1 %v874_v0  ;;  %p808_p7 = por %p807_p12, %p806_p6 }
  0x60   : > { %593 = vmatpush3.bf16.msra.mxu0 %v701_v3 }
  0x61   : > { %594 = vmatprep.subr.bf16.mxu0 %v874_v0  ;;  %p809_p9 = pnand %p808_p7, %p802_p2 }
  0x62   : > { %613 = vmatpush3.bf16.msra.mxu1 %v709_v12 }
  0x63   : > { %614 = vmatprep.subr.bf16.mxu1 %v874_v0 }
  0x64   : > { %595 = vmatpush3.bf16.msra.mxu0 %v702_v4 }
  0x65   : > { %596 = vmatprep.subr.bf16.mxu0 %v874_v0 }
  0x66   : > { %615 = vmatpush3.bf16.msra.mxu1 %v710_v13 }
  0x67   : > { %616 = vmatprep.subr.bf16.mxu1 %v874_v0 }
  0x68   : > { %597 = vmatpush3.bf16.msra.mxu0 %v703_v5 }
  0x69   : > { %598 = vmatprep.subr.bf16.mxu0 %v874_v0 }
  0x6a   : > { %617 = vmatpush3.bf16.msra.mxu1 %v711_v14 }
  0x6b   : > { %618 = vmatprep.subr.bf16.mxu1 %v874_v0 }
  0x6c   : > { %599 = vmatpush3.bf16.msra.mxu0 %v704_v6 }
  0x6d   : > { %600 = vmatprep.subr.bf16.mxu0 %v874_v0 }
  0x6e   : > { %619 = vmatpush3.bf16.msra.mxu1 %v712_v15 }
  0x6f   : > { %620 = vmatprep.subr.bf16.mxu1 %v874_v0 }
  0x70   : > { %601 = vmatpush3.bf16.msra.mxu0 %v705_v7 }
  0x71   : > { %602 = vmatprep.subr.bf16.mxu0 %v874_v0 }
  0x72   : > { %621 = vmatpush3.bf16.msra.mxu1 %v713_v16 }
  0x73   : > { %622 = vmatprep.subr.bf16.mxu1 %v874_v0 }
  0x74   : > { %603 = vmatpush3.bf16.msra.mxu0 %v706_v8 }
  0x76   : > { %623 = vmatpush3.bf16.msra.mxu1 %v714_v17 }
  0x77   : > { %605 = vmatmul.mubr.bf16.vlgmr.msra.gmra.mxu0 %v216_v9 }
 0x137   : > { %v315_v18 = vpop.f32.mrf.mxu0 }
 0x138   : > { %v557_v19 = vmul.f32 -1.442695, %v315_v18 }
 0x139   : > { %v606_v20 = vpop.f32.mrf.mxu0 }
 0x13a   : > { %715 = vpow2.f32 %v557_v19 }
 0x13b   : > { %v318_v21 = vpop.f32.mrf.mxu0 }
 0x13d   : > { %v607_v22 = vpop.f32.mrf.mxu0 }
 0x147   : > { %v716_v23 = vpop.eup %715 }
 0x148   : > { %v324_v24 = vadd.f32 1.0, %v716_v23 }
 0x14a   : > { %717 = vrcp.f32 %v324_v24 }
 0x157   : > { %v718_v25 = vpop.eup %717 }
 0x158   : > { %v327_v26 = vmul.f32 %v718_v25, %v315_v18 }
 0x15a   : > { %v328_v27 = vpack.c.bf16 %v327_v26, %v327_v26 }
 0x15c   : > { %625 = vmatmul.mubr.bf16.vlgmr.msra.gmra.mxu1 %v328_v27 }
 0x21c   : > { %v427_v28 = vpop.f32.mrf.mxu1 }
 0x21d   : > { %433 = vst [vmem:[%s214_s20] sm:$0xff] %v427_v28 }
 0x21e   : > { %v626_v29 = vpop.f32.mrf.mxu1 }
 0x21f   : > { %812 = shalt.err (!%p809_p9)
}
 0x220   : > { %s813_s17 = scalar_lea.hbm %s1037_s5, 128  ;;  %s817_s24 = scalar_lea.hbm %s1081_s3, 256 }
 0x221   : > { %p814_p13 = scmp.ne.s32.totalorder %s1037_s5, %s813_s17  ;;  %p818_p0 = scmp.lt.s32.totalorder %s1037_s5, %s1081_s3 }
 0x222   : > { %p819_p4 = scmp.lt.s32.totalorder %s817_s24, %s813_s17 }
 0x223   : > { %p815_p5 = pnand %p814_p13, %p1097_p11 }
 0x224   : > { %p820_p8 = por %p819_p4, %p818_p0 }
 0x225   : > { %p816_p10 = pneg %p815_p5 }
 0x227   : > { %p821_p3 = pnand %p820_p8, %p816_p10 }
 0x229   : > { %824 = shalt.err (!%p821_p3)
}
 0x22a   : > { %638 = dma.vmem_to_hbm [thread:$0]  (%p1097_p11), %s1032_s25, 128, %s1037_s5, %s435_s6   ;;  %v430_v30 = vpop.f32.mrf.mxu1 }
 0x22c   : > { %v627_v31 = vpop.f32.mrf.mxu1 }
 0x22d PF: > { %s460_s4 = sand.u32 1, %s855_s12   ;;  %p1098_p1 = scmp.ne.s32.totalorder %s1087_s19, 0 }
 0x22e   : > { %p1099_p2 = scmp.ge.s32.totalorder %s867_s15, 2  ;;  %s461_s18 = scalar_lea.sflag [#allocation4], %s460_s4 }
 0x230   : > { %p652_p6 = pnand %p1099_p2, %p1098_p1 }
 0x232   : > { %p653_p12 = pneg %p652_p6 }
 0x234   : > { %850 = dma.done.wait (%p653_p12), %s461_s18, 128  }
 0x235   : > { %852 = vsyncadd (%p653_p12), %s461_s18, 4294967168  ;;  %p17_p11 = scmp.ge.s32.totalorder %s969_s7, 4   ;;  %s1100_s12 = smov %s859_s13 }
 0x236   : > { %s1101_s13 = smov %s863_s14  ;;  %s1102_s14 = smov %s985_s11 }
 0x237   : > { %s1103_s15 = smov %s969_s7  ;;  %19 = sbr.rel (!%p17_p11) target bundleno = 6 (0x6), region = 85 }
 0x23c   :  { %466 = vsyncpa [#allocation3], 1 }
 0x23d   :  { %468 = vsyncpa [#allocation3 + $0x1], 1 }
 0x23e   :  { %469 = vsyncpa [#allocation6], 1 }
 0x23f   :  { %470 = vsyncpa [#allocation4], 1 }
 0x240   :  { %472 = vsyncpa [#allocation4 + $0x1], 1 }

</bundles_post_ra>
